<compile_context>
chip_gen: v5e
topology: v5e:2x2
jax: 0.10.0
libtpu: 0.0.40
codegen_flags: <defaults>
</compile_context>

<pallas_src>
import functools

import jax
import jax.numpy as jnp
from jax.experimental import pallas as pl
from jax.experimental.pallas import tpu as pltpu

_LANE = 128
_SUBLANE = 8
# Working budget for per-step resident buffers (double-buffered in + out plus
# in-body f32 temporaries).  Conservative for all generations once the scoped
# limit below is applied (v5e/v6e: 128 MiB physical VMEM, v7x: 64 MiB).
_TILE_BUDGET_BYTES = 16 * 1024 * 1024
_VMEM_LIMIT_BYTES = 32 * 1024 * 1024
_MAX_TH = 2048  # beyond ~512 lanes the HBM roofline is already reached


def _round_up(x, m):
    return ((x + m - 1) // m) * m


def _round_down(x, m):
    return (x // m) * m


def _largest_lane_tile(h_pad, th_max):
    """Largest multiple of _LANE that divides h_pad and is <= th_max."""
    n = h_pad // _LANE
    d_max = max(1, th_max // _LANE)
    best = 1
    for d in range(1, min(n, d_max) + 1):
        if n % d == 0:
            best = d
    return best * _LANE


def _pad_input(x, s_pad, h_pad):
    s, h = x.shape
    if s_pad == s and h_pad == h:
        return x
    # Finite, very-negative fill: exp(fill - max) underflows to 0, no inf/nan.
    fill = float(jnp.finfo(x.dtype).min)
    return jnp.pad(x, ((0, s_pad - s), (0, h_pad - h)), constant_values=fill)


# ---------------- Path A: whole reduction axis resident per tile ------------

def _resident_kernel(x_ref, o_ref):
    xi = x_ref[...]
    c = jnp.max(xi, axis=0, keepdims=True)              # max in input dtype (exact)
    e = jnp.exp((xi - c).astype(jnp.float32))           # (S, TH) f32
    total = jnp.sum(e, axis=0, keepdims=True)           # (1, TH)
    inv = pl.reciprocal(total, approx=True)             # EUP slot, not VALU divide
    o_ref[...] = (e * inv).astype(o_ref.dtype)


def _softmax_resident(x, th):
    s, h = x.shape
    return pl.pallas_call(
        _resident_kernel,
        out_shape=jax.ShapeDtypeStruct((s, h), x.dtype),
        grid_spec=pltpu.PrefetchScalarGridSpec(
            num_scalar_prefetch=0,
            grid=(h // th,),
            in_specs=[pl.BlockSpec((s, th), lambda j: (0, j))],
            out_specs=pl.BlockSpec((s, th), lambda j: (0, j)),
        ),
        compiler_params=pltpu.CompilerParams(
            dimension_semantics=("parallel",),
            vmem_limit_bytes=_VMEM_LIMIT_BYTES,
        ),
    )(x)


# ---------------- Path B: two-pass online softmax for very tall S -----------

def _stats_kernel(x_ref, m_ref, l_ref):
    s = pl.program_id(1)

    @pl.when(s == 0)
    def _():
        m_ref[...] = jnp.full_like(m_ref, -jnp.inf)
        l_ref[...] = jnp.zeros_like(l_ref)

    x = x_ref[...].astype(jnp.float32)
    m_prev = m_ref[...]
    m_new = jnp.maximum(m_prev, jnp.max(x, axis=0, keepdims=True))
    alpha = jnp.exp(m_prev - m_new)
    l_ref[...] = l_ref[...] * alpha + jnp.sum(jnp.exp(x - m_new), axis=0,
                                              keepdims=True)
    m_ref[...] = m_new


def _normalize_kernel(x_ref, m_ref, l_ref, o_ref):
    x = x_ref[...].astype(jnp.float32)
    inv = pl.reciprocal(l_ref[...], approx=True)
    o_ref[...] = (jnp.exp(x - m_ref[...]) * inv).astype(o_ref.dtype)


def _softmax_two_pass(x, th, ts):
    s, h = x.shape
    grid = (h // th, s // ts)   # reduction axis (s-blocks) kept last
    stats_specs = [pl.BlockSpec((1, th), lambda j, k: (0, j)),
                   pl.BlockSpec((1, th), lambda j, k: (0, j))]
    m, l = pl.pallas_call(
        _stats_kernel,
        out_shape=(jax.ShapeDtypeStruct((1, h), jnp.float32),
                   jax.ShapeDtypeStruct((1, h), jnp.float32)),
        grid_spec=pltpu.PrefetchScalarGridSpec(
            num_scalar_prefetch=0,
            grid=grid,
            in_specs=[pl.BlockSpec((ts, th), lambda j, k: (k, j))],
            out_specs=stats_specs,
        ),
        compiler_params=pltpu.CompilerParams(
            dimension_semantics=("parallel", "arbitrary"),
            vmem_limit_bytes=_VMEM_LIMIT_BYTES,
        ),
    )(x)
    return pl.pallas_call(
        _normalize_kernel,
        out_shape=jax.ShapeDtypeStruct((s, h), x.dtype),
        grid_spec=pltpu.PrefetchScalarGridSpec(
            num_scalar_prefetch=0,
            grid=grid,
            in_specs=[pl.BlockSpec((ts, th), lambda j, k: (k, j))] + stats_specs,
            out_specs=pl.BlockSpec((ts, th), lambda j, k: (k, j)),
        ),
        compiler_params=pltpu.CompilerParams(
            dimension_semantics=("parallel", "parallel"),
            vmem_limit_bytes=_VMEM_LIMIT_BYTES,
        ),
    )(x, m, l)


# ---------------- Wrapper / tile selection -----------------------------------

def _stable_softmax_2d(x, tile_budget_bytes):
    s, h = x.shape
    db = jnp.dtype(x.dtype).itemsize
    # Per-lane-column VMEM cost when the whole reduction axis is resident:
    # 2x double-buffered input + 2x double-buffered output + ~2 f32 temps.
    resident_bytes_per_lane = s * (4 * db + 8)

    # ---- Path A: whole reduction axis resident in each tile ----
    if h <= _LANE:
        if h * resident_bytes_per_lane <= tile_budget_bytes:
            return _softmax_resident(x, h)          # full-extent tile (legal)
        h_pad = h
    else:
        h_pad = _round_up(h, _LANE)
        th_max = min(_round_down(tile_budget_bytes // resident_bytes_per_lane,
                                 _LANE), _MAX_TH)
        if h_pad >= 2 * _LANE:
            th_max = min(th_max, h_pad // 2)        # >=2 grid steps for v7x's 2 TCs
        if th_max >= _LANE:
            th = _largest_lane_tile(h_pad, th_max)
            out = _softmax_resident(_pad_input(x, s, h_pad), th)
            return out if h_pad == h else out[:, :h]

    # ---- Path B: reduction axis too tall -> two-pass online softmax ----
    if h <= _LANE:
        th = h
    else:
        th = _largest_lane_tile(h_pad, min(1024, h_pad // 2))
    row_bytes = th * (4 * db + 8)
    ts = _round_down(tile_budget_bytes // row_bytes, _SUBLANE)
    ts = max(_SUBLANE, min(ts, 4096, _round_up(s, _SUBLANE)))
    s_pad = _round_up(s, ts)
    out = _softmax_two_pass(_pad_input(x, s_pad, h_pad), th, ts)
    if s_pad != s or h_pad != h:
        out = out[:s, :h]
    return out


@functools.partial(jax.jit, static_argnames=("tile_budget_bytes",))
def stable_softmax(x, *, tile_budget_bytes=_TILE_BUDGET_BYTES):
    """Numerically stable softmax over axis 0 (matches StableSoftmax.forward)."""
    if x.ndim == 2:
        return _stable_softmax_2d(x, tile_budget_bytes)
    orig_shape = x.shape
    x2 = x.reshape(orig_shape[0], -1) if x.ndim > 1 else x.reshape(-1, 1)
    return _stable_softmax_2d(x2, tile_budget_bytes).reshape(orig_shape)


if __name__ == "__main__":
    key = jax.random.PRNGKey(0)

    # Required small shape from the module: seq=8, hidden=32.
    x = jax.random.normal(key, (8, 32), dtype=jnp.float32)
    out = stable_softmax(x)
    jax.block_until_ready(out)
    ref = jax.nn.softmax(x, axis=0)
    assert out.shape == x.shape and out.dtype == x.dtype
    assert jnp.allclose(out, ref, atol=2e-3, rtol=2e-3), "small-shape mismatch"

    # Multi-tile resident path with a non-multiple-of-128 hidden dim (padding).
    k1, k2 = jax.random.split(key)
    x2 = jax.random.normal(k1, (64, 200), dtype=jnp.float32)
    out2 = stable_softmax(x2)
    ref2 = jax.nn.softmax(x2, axis=0)
    assert jnp.allclose(out2, ref2, atol=2e-3, rtol=2e-3), "resident path mismatch"

    # Exercise the two-pass online-softmax path by forcing a tiny tile budget.
    x3 = jax.random.normal(k2, (512, 256), dtype=jnp.float32)
    out3 = stable_softmax(x3, tile_budget_bytes=256 * 1024)
    ref3 = jax.nn.softmax(x3, axis=0)
    assert jnp.allclose(out3, ref3, atol=2e-3, rtol=2e-3), "two-pass path mismatch"

    print("KERNEL_OK")
</pallas_src>

<mosaic_0001>
module attributes {stable_mosaic.version = 11 : i64} {
  func.func @_resident_kernel(%arg0: i32, %arg1: memref<8x32xf32, #tpu.memory_space<vmem>>, %arg2: memref<8x32xf32, #tpu.memory_space<vmem>>) attributes {dimension_semantics = [#tpu.dimension_semantics<parallel>], iteration_bounds = array<i64: 1>, scalar_prefetch = 0 : i64, scratch_operands = 0 : i64, tpu.core_type = #tpu.core_type<tc>, window_params = [{transform_indices = @transform_0, window_bounds = array<i64: 8, 32>}, {transform_indices = @transform_1, window_bounds = array<i64: 8, 32>}]} {
    %c0 = arith.constant 0 : index
    %c0_0 = arith.constant 0 : index
    %0 = vector.load %arg1[%c0, %c0_0] : memref<8x32xf32, #tpu.memory_space<vmem>>, vector<8x32xf32>
    %cst = arith.constant dense<0xFF800000> : vector<32xf32>
    %1 = vector.multi_reduction <maximumf>, %0, %cst [0] : vector<8x32xf32> to vector<32xf32>
    %2 = vector.shape_cast %1 : vector<32xf32> to vector<1x32xf32>
    %3 = vector.broadcast %2 : vector<1x32xf32> to vector<8x32xf32>
    %4 = arith.subf %0, %3 : vector<8x32xf32>
    %5 = math.exp %4 : vector<8x32xf32>
    %cst_1 = arith.constant dense<0.000000e+00> : vector<32xf32>
    %6 = vector.multi_reduction <add>, %5, %cst_1 [0] : vector<8x32xf32> to vector<32xf32>
    %7 = vector.shape_cast %6 : vector<32xf32> to vector<1x32xf32>
    %8 = tpu.reciprocal %7 {approx = true} : vector<1x32xf32> -> vector<1x32xf32>
    %9 = vector.broadcast %8 : vector<1x32xf32> to vector<8x32xf32>
    %10 = arith.mulf %5, %9 : vector<8x32xf32>
    %c0_2 = arith.constant 0 : index
    %c0_3 = arith.constant 0 : index
    %11 = vector.load %arg2[%c0_2, %c0_3] : memref<8x32xf32, #tpu.memory_space<vmem>>, vector<8x32xf32>
    tpu.vector_store %arg2[%c0_2, %c0_3], %10 {strides = array<i32>} : memref<8x32xf32, #tpu.memory_space<vmem>>, vector<8x32xf32>,
    return
  }
  func.func @transform_0(%arg0: i32) -> (i32, i32) {
    %c0_i32 = arith.constant 0 : i32
    %c0_i32_0 = arith.constant 0 : i32
    return %c0_i32, %arg0 : i32, i32
  }
  func.func @transform_1(%arg0: i32) -> (i32, i32) {
    %c0_i32 = arith.constant 0 : i32
    %c0_i32_0 = arith.constant 0 : i32
    return %c0_i32, %arg0 : i32, i32
  }
}

</mosaic_0001>

<bundles_post_ra>
// kernel: stable_softmax.1
= control target key start
LH: loop header
LB: loop body
LE: loop exit
PB: predicated region body
PF: predicated region fallthrough
CT: control target
= control target key end

     0   :  { %6 = vsyncpa [#allocation3], 0  ;;  %s141_s0 = inlined_call_operand.hbm [shape: f32[8,32], index: 0, kind: input, shape index: {}]   ;;  %s142_s1 = inlined_call_operand.hbm [shape: f32[8,32], index: 1, kind: output, shape index: {}]  }
   0x1   :  { %7 = vsyncpa [#allocation4], 0  ;;  %s13_s8 = sshll.u32 %s141_s0, 4  ;;  %s120_s9 = smov [#allocation2]   ;;  %s14_s8 = int_to_ptr.hbm [resolvable:$true] %s13_s8 }
   0x2   :  { %s15_s10 = sshll.u32 %s120_s9, 4  ;;  %s16_s10 = int_to_ptr.vmem [resolvable:$true] %s15_s10 }
   0x3   :  { %18 = dma.hbm_to_vmem [thread:$0]  %s14_s8, 128, %s16_s10, [#allocation3]  }
   0x4   :  { %116 = dma.done.wait [#allocation3], 128  }
   0x5   :  { %117 = vsyncadd [#allocation3], 4294967168  ;;  %vm24_vm0 = vcmask 261120   ;;  %v23_v0 = vld [vmem:[#allocation2] sm:$0xff]  ;;  %s121_s0 = smov [#allocation5]   ;;  %s52_s14 = sshll.u32 %s142_s1, 4  ;;  %s53_s14 = int_to_ptr.hbm [resolvable:$true] %s52_s14 }
   0x6   :  { %v25_v1 = vsel %vm24_vm0, %v23_v0, -inf  ;;  %s50_s11 = sshll.u32 %s121_s0, 4  ;;  %s51_s11 = int_to_ptr.vmem [resolvable:$true] %s50_s11 }
   0x7   :  { %v26_v2 = vrot.slane %v25_v1, 4 }
   0x9   :  { %v27_v3 = vmax.f32 %v25_v1, %v26_v2 }
   0xb   :  { %v28_v4 = vrot.slane %v27_v3, 2 }
   0xd   :  { %v29_v5 = vmax.f32 %v27_v3, %v28_v4 }
   0xf   :  { %v30_v6 = vrot.slane %v29_v5, 1 }
  0x11   :  { %v31_v7 = vmax.f32 %v29_v5, %v30_v6 }
  0x13   :  { %v32_v8 = vsub.f32 %v23_v0, %v31_v7 }
  0x15   :  { %v33_v9 = vmul.f32 1.442695, %v32_v8 }
  0x17   :  { %64 = vpow2.f32 %v33_v9 }
  0x1d   :  { %v65_v10 = vpop.eup %64 }
  0x1e   :  { %v35_v11 = vsel %vm24_vm0, %v65_v10, 0.0 }
  0x1f   :  { %v36_v12 = vrot.slane %v35_v11, 4 }
  0x21   :  { %v37_v13 = vadd.f32 %v36_v12, %v35_v11 }
  0x23   :  { %v38_v14 = vrot.slane %v37_v13, 2 }
  0x25   :  { %v39_v15 = vadd.f32 %v38_v14, %v37_v13 }
  0x27   :  { %v40_v16 = vrot.slane %v39_v15, 1 }
  0x29   :  { %v41_v17 = vadd.f32 %v40_v16, %v39_v15 }
  0x2b   :  { %66 = vrcp.f32 %v41_v17 }
  0x31   :  { %v67_v18 = vpop.eup %66 }
  0x32   :  { %v43_v19 = vmul.f32 %v67_v18, %v65_v10 }
  0x34   :  { %44 = vst.msk [vmem:[#allocation5] sm:$0xff] %vm24_vm0, %v43_v19 }
  0x35   :  { %55 = dma.vmem_to_hbm [thread:$0]  %s51_s11, 128, %s53_s14, [#allocation4]  }
  0x36   :  { %118 = dma.done.wait [#allocation4], 128  }
  0x37   :  { %119 = vsyncadd [#allocation4], 4294967168 }
  0x38   :  { %60 = vsyncpa [#allocation3], 1 }
  0x39   :  { %61 = vsyncpa [#allocation4], 1 }

</bundles_post_ra>
